<compile_context>
chip_gen: v7x
topology: tpu7x:2x2x1
jax: 0.10.0
libtpu: 0.0.40
codegen_flags: <defaults>
</compile_context>

<pallas_src>
import numpy as np

import jax
import jax.numpy as jnp
from jax.experimental import pallas as pl
from jax.experimental.pallas import tpu as pltpu

# ---------------- model hyper-parameters (synthetic, deterministic) ----------
B, C, H, W = 6, 4, 16, 16        # input images (NCHW)
KH, KW = 3, 3                    # conv kernel (SAME padding, stride 1)
OC = 8                           # conv output channels
Z2 = 32                          # feature_extractor output dim (= 2 * z_dim)
ZDIM = Z2 // 2                   # z_dim = 16
HIDDEN = 32                      # classifier mlp hidden width
NUM_CLASSES = 10
HP, WP = H + 2, W + 2            # padded spatial dims
WOC = W * OC                     # conv-output lane width = 128 (lane dense)
KBAND = KH * WP * C              # fused conv contraction depth = 216
LANE = 128                       # padded logits width (lane-dense output)

# Batch tile: BTILE samples per grid step.  At realistic batch sizes raise
# BTILE so BTILE*H reaches 128 (v5e) / 256 (v6e, v7x) MXU rows; keep
# ceil(B/BTILE) >= 2 so v7x can split the grid across its two TensorCores.
BTILE = 4
NSTEPS = -(-B // BTILE)          # grid length (= 2 here)
BPAD = NSTEPS * BTILE            # host-padded batch


# ----------------------------- Pallas kernel ---------------------------------
def srnet_kernel(xs_ref, wconv_ref, pool_ref, proj_ref, w1_ref, w2_ref,
                 biases_ref, eps_ref, out_ref):
    bias = biases_ref[...]                                 # [8, LANE]  f32

    # --- 3x3 SAME conv: one fused MXU matmul, K = KH*WP*C = 216 -------------
    acc = jnp.dot(xs_ref[...], wconv_ref[...],
                  preferred_element_type=jnp.float32)      # [BTILE*H, W*OC]
    hconv = jnp.maximum(acc + bias[0:1, :WOC], 0.0)        # bias + ReLU (f32)

    # --- global avg pool of the whole tile: block-diag ones on the MXU ------
    srow = jnp.dot(pool_ref[...], hconv.astype(jnp.bfloat16),
                   preferred_element_type=jnp.float32)     # [BTILE, W*OC]

    # --- fused projection: sigma params and mu-path-through-w1 in one dot ---
    t = jnp.dot(srow.astype(jnp.bfloat16), proj_ref[...],
                preferred_element_type=jnp.float32)        # [BTILE, LANE]
    z_sigma = jax.nn.softplus(t[:, :ZDIM] + bias[1:2, :ZDIM])   # [BTILE, ZDIM]
    h1_mu = t[:, ZDIM:ZDIM + HIDDEN]                       # (mu @ w1), bias folded

    # --- reparameterized sample contribution + classifier -------------------
    sz = z_sigma * eps_ref[0]                              # [BTILE, ZDIM] f32
    h1 = jnp.maximum(
        h1_mu
        + jnp.dot(sz.astype(jnp.bfloat16), w1_ref[...],
                  preferred_element_type=jnp.float32)
        + bias[2:3, :HIDDEN],
        0.0)                                               # [BTILE, HIDDEN]
    logits = jnp.dot(h1.astype(jnp.bfloat16), w2_ref[...],
                     preferred_element_type=jnp.float32) + bias[3:4, :]
    out_ref[0] = logits                                    # [BTILE, LANE]


# ------------------------------- host glue -----------------------------------
def init_params(key):
    """Raw (f32, 'PyTorch-like') parameters of the synthetic SRNet."""
    ks = jax.random.split(key, 8)
    s = 0.1
    conv_w = s * jax.random.normal(ks[0], (KH, KW, C, OC), jnp.float32)
    conv_b = s * jax.random.normal(ks[1], (OC,), jnp.float32)
    wf = s * jax.random.normal(ks[2], (OC, Z2), jnp.float32)
    bf_ = s * jax.random.normal(ks[3], (Z2,), jnp.float32)
    w1 = s * jax.random.normal(ks[4], (ZDIM, HIDDEN), jnp.float32)
    b1 = s * jax.random.normal(ks[5], (HIDDEN,), jnp.float32)
    w2 = s * jax.random.normal(ks[6], (HIDDEN, NUM_CLASSES), jnp.float32)
    b2 = s * jax.random.normal(ks[7], (NUM_CLASSES,), jnp.float32)
    return (conv_w, conv_b, wf, bf_, w1, b1, w2, b2)


def pack_params(raw):
    """One-time host-side repack: fused banded conv weights, block-diagonal
    pooling matrix, folded lane-dense projection, bf16 matmul operands, and all
    biases in a single lane-dense (8, 128) f32 block."""
    conv_w, conv_b, wf, bf_, w1, b1, w2, b2 = [np.asarray(p, np.float32)
                                               for p in raw]

    # Banded conv weight fused over KH:
    #   wconv[i*WP*C + (w+j)*C + c, w*OC + oc] = conv_w[i, j, c, oc]
    # (the width shift is baked into the layout; KH bands concatenated on K).
    wband = np.zeros((KH, WP * C, WOC), np.float32)
    for i in range(KH):
        for j in range(KW):
            for w in range(W):
                wband[i, (w + j) * C:(w + j) * C + C,
                      w * OC:(w + 1) * OC] = conv_w[i, j]
    wconv = wband.reshape(KBAND, WOC)

    # Block-diagonal ones matrix: pools all BTILE samples with one MXU dot.
    pooldiag = np.zeros((BTILE, BTILE * H), np.float32)
    for b in range(BTILE):
        pooldiag[b, b * H:(b + 1) * H] = 1.0

    # Folded (global-avg-pool @ wf) projections; the mu half is additionally
    # folded through the classifier's first layer (shortens the dependent
    # matmul chain) and both are packed into one lane-dense [W*OC, 128] matrix.
    pwf_mu = np.tile(wf[:, :ZDIM] / float(H * W), (W, 1))     # [WOC, ZDIM]
    pwf_sig = np.tile(wf[:, ZDIM:] / float(H * W), (W, 1))    # [WOC, ZDIM]
    proj = np.zeros((WOC, LANE), np.float32)
    proj[:, :ZDIM] = pwf_sig
    proj[:, ZDIM:ZDIM + HIDDEN] = pwf_mu @ w1

    # Lane-padded classifier output weight.
    w2p = np.zeros((HIDDEN, LANE), np.float32)
    w2p[:, :NUM_CLASSES] = w2

    # All biases packed into one (8, 128) f32 tile (1 DMA instead of 4).
    biases = np.zeros((8, LANE), np.float32)
    biases[0, :WOC] = np.tile(conv_b, W)          # conv bias per (w, oc)
    biases[1, :ZDIM] = bf_[ZDIM:]                 # sigma-half of feature bias
    biases[2, :HIDDEN] = bf_[:ZDIM] @ w1 + b1     # mu bias folded through w1, + b1
    biases[3, :NUM_CLASSES] = b2

    return (jnp.asarray(wconv, jnp.bfloat16),
            jnp.asarray(pooldiag, jnp.bfloat16),
            jnp.asarray(proj, jnp.bfloat16),
            jnp.asarray(w1, jnp.bfloat16),
            jnp.asarray(w2p, jnp.bfloat16),
            jnp.asarray(biases, jnp.float32))


@jax.jit
def srnet_forward(x_nchw, packed, eps):
    wconv, pooldiag, proj, w1, w2p, biases = packed

    # Host layout plumbing: NCHW -> zero-padded NHWC with (w, c) flattened on
    # the lane axis, then the KH=3 row-shifted bands concatenated along lanes
    # so the conv is a single K=216 matmul per tile.  Batch is padded to a
    # multiple of BTILE so the last grid step is full.
    # TODO(synk): at realistic shapes accept NHWC/bf16 input directly to avoid
    #   this extra XLA HBM round trip before the kernel.
    x = jnp.transpose(x_nchw, (0, 2, 3, 1))                       # [B, H, W, C]
    xpad = jnp.pad(x, ((0, BPAD - B), (1, 1), (1, 1), (0, 0)))    # [BPAD,HP,WP,C]
    xpad = xpad.reshape(BPAD, HP, WP * C)
    xs = jnp.concatenate([xpad[:, i:i + H, :] for i in range(KH)], axis=-1)
    xs = xs.reshape(BPAD * H, KBAND).astype(jnp.bfloat16)         # [BPAD*H, 216]

    epsp = jnp.pad(eps, ((0, BPAD - B), (0, 0)))
    epsp = epsp.reshape(NSTEPS, BTILE, ZDIM)

    out = pl.pallas_call(
        srnet_kernel,
        out_shape=jax.ShapeDtypeStruct((NSTEPS, BTILE, LANE), jnp.float32),
        grid=(NSTEPS,),
        in_specs=[
            pl.BlockSpec((BTILE * H, KBAND), lambda b: (b, 0)),       # stacked image
            pl.BlockSpec((KBAND, WOC), lambda b: (0, 0)),             # fused conv w
            pl.BlockSpec((BTILE, BTILE * H), lambda b: (0, 0)),       # pool ones
            pl.BlockSpec((WOC, LANE), lambda b: (0, 0)),              # fused proj
            pl.BlockSpec((ZDIM, HIDDEN), lambda b: (0, 0)),           # mlp w1
            pl.BlockSpec((HIDDEN, LANE), lambda b: (0, 0)),           # mlp w2 (pad)
            pl.BlockSpec((8, LANE), lambda b: (0, 0)),                # packed biases
            pl.BlockSpec((1, BTILE, ZDIM), lambda b: (b, 0, 0)),      # eps per tile
        ],
        out_specs=pl.BlockSpec((1, BTILE, LANE), lambda b: (b, 0, 0)),
        compiler_params=pltpu.CompilerParams(
            dimension_semantics=("parallel",)),
    )(xs, wconv, pooldiag, proj, w1, w2p, biases, epsp)

    return out.reshape(BPAD, LANE)[:B, :NUM_CLASSES]


def srnet_reference(x_nchw, raw, eps):
    """Pure-JAX f32 reference with identical semantics (for validation)."""
    conv_w, conv_b, wf, bf_, w1, b1, w2, b2 = raw
    x = jnp.transpose(x_nchw, (0, 2, 3, 1))
    xp = jnp.pad(x, ((0, 0), (1, 1), (1, 1), (0, 0)))
    h = jnp.zeros((x.shape[0], H, W, OC), jnp.float32)
    for i in range(KH):
        for j in range(KW):
            h = h + jnp.einsum('bhwc,co->bhwo',
                               xp[:, i:i + H, j:j + W, :], conv_w[i, j])
    h = jax.nn.relu(h + conv_b)
    feat = h.mean(axis=(1, 2))
    zp = feat @ wf + bf_
    z = zp[:, :ZDIM] + jax.nn.softplus(zp[:, ZDIM:]) * eps
    h1 = jax.nn.relu(z @ w1 + b1)
    return h1 @ w2 + b2


if __name__ == "__main__":
    key = jax.random.PRNGKey(0)
    kx, kp, ke = jax.random.split(key, 3)
    x = jax.random.normal(kx, (B, C, H, W), jnp.float32)      # NCHW input
    raw_params = init_params(kp)
    packed = pack_params(raw_params)
    # eps for the reparameterization trick (rsample, num_samples=1)
    eps = jax.random.normal(ke, (B, ZDIM), jnp.float32)

    logits = srnet_forward(x, packed, eps)
    jax.block_until_ready(logits)
    assert logits.shape == (B, NUM_CLASSES)
    assert bool(jnp.all(jnp.isfinite(logits)))

    ref = srnet_reference(x, raw_params, eps)
    assert bool(jnp.allclose(logits, ref, atol=5e-2, rtol=5e-2)), (logits, ref)
    print("KERNEL_OK")
</pallas_src>

<mosaic_0001>
module attributes {stable_mosaic.version = 11 : i64} {
  func.func @srnet_kernel(%arg0: i32, %arg1: memref<64x216xbf16, #tpu.memory_space<vmem>>, %arg2: memref<216x128xbf16, #tpu.memory_space<vmem>>, %arg3: memref<4x64xbf16, #tpu.memory_space<vmem>>, %arg4: memref<128x128xbf16, #tpu.memory_space<vmem>>, %arg5: memref<16x32xbf16, #tpu.memory_space<vmem>>, %arg6: memref<32x128xbf16, #tpu.memory_space<vmem>>, %arg7: memref<8x128xf32, #tpu.memory_space<vmem>>, %arg8: memref<1x4x16xf32, #tpu.memory_space<vmem>>, %arg9: memref<1x4x128xf32, #tpu.memory_space<vmem>>) attributes {dimension_semantics = [#tpu.dimension_semantics<parallel>], iteration_bounds = array<i64: 2>, scalar_prefetch = 0 : i64, scratch_operands = 0 : i64, tpu.core_type = #tpu.core_type<tc>, window_params = [{transform_indices = @transform_0, window_bounds = array<i64: 64, 216>}, {pipeline_mode = #tpu.pipeline_mode<synchronous>, transform_indices = @transform_1, window_bounds = array<i64: 216, 128>}, {pipeline_mode = #tpu.pipeline_mode<synchronous>, transform_indices = @transform_2, window_bounds = array<i64: 4, 64>}, {pipeline_mode = #tpu.pipeline_mode<synchronous>, transform_indices = @transform_3, window_bounds = array<i64: 128, 128>}, {pipeline_mode = #tpu.pipeline_mode<synchronous>, transform_indices = @transform_4, window_bounds = array<i64: 16, 32>}, {pipeline_mode = #tpu.pipeline_mode<synchronous>, transform_indices = @transform_5, window_bounds = array<i64: 32, 128>}, {pipeline_mode = #tpu.pipeline_mode<synchronous>, transform_indices = @transform_6, window_bounds = array<i64: 8, 128>}, {transform_indices = @transform_7, window_bounds = array<i64: 1, 4, 16>}, {transform_indices = @transform_8, window_bounds = array<i64: 1, 4, 128>}]} {
    %c0 = arith.constant 0 : index
    %c0_0 = arith.constant 0 : index
    %0 = vector.load %arg7[%c0, %c0_0] : memref<8x128xf32, #tpu.memory_space<vmem>>, vector<8x128xf32>
    %c0_1 = arith.constant 0 : index
    %c0_2 = arith.constant 0 : index
    %1 = vector.load %arg1[%c0_1, %c0_2] : memref<64x216xbf16, #tpu.memory_space<vmem>>, vector<64x216xbf16>
    %c0_3 = arith.constant 0 : index
    %c0_4 = arith.constant 0 : index
    %2 = vector.load %arg2[%c0_3, %c0_4] : memref<216x128xbf16, #tpu.memory_space<vmem>>, vector<216x128xbf16>
    %cst = arith.constant dense<0.000000e+00> : vector<64x128xf32>
    %3 = tpu.matmul %1, %2, %cst {dimension_numbers = #tpu.dot_dimension_numbers<[1], [0], [0], [1], [0, 0, 1, 1], [], []>} : vector<64x216xbf16>, vector<216x128xbf16>, vector<64x128xf32> -> vector<64x128xf32>
    %4 = vector.extract_strided_slice %0 {offsets = [0, 0], sizes = [1, 128], strides = [1, 1]} : vector<8x128xf32> to vector<1x128xf32>
    %5 = vector.broadcast %4 : vector<1x128xf32> to vector<64x128xf32>
    %6 = arith.addf %3, %5 : vector<64x128xf32>
    %cst_5 = arith.constant 0.000000e+00 : f32
    %7 = vector.broadcast %cst_5 : f32 to vector<64x128xf32>
    %8 = arith.maximumf %6, %7 : vector<64x128xf32>
    %c0_6 = arith.constant 0 : index
    %c0_7 = arith.constant 0 : index
    %9 = vector.load %arg3[%c0_6, %c0_7] : memref<4x64xbf16, #tpu.memory_space<vmem>>, vector<4x64xbf16>
    %10 = arith.truncf %8 : vector<64x128xf32> to vector<64x128xbf16>
    %cst_8 = arith.constant dense<0.000000e+00> : vector<4x128xf32>
    %11 = tpu.matmul %9, %10, %cst_8 {dimension_numbers = #tpu.dot_dimension_numbers<[1], [0], [0], [1], [0, 0, 1, 1], [], []>} : vector<4x64xbf16>, vector<64x128xbf16>, vector<4x128xf32> -> vector<4x128xf32>
    %12 = arith.truncf %11 : vector<4x128xf32> to vector<4x128xbf16>
    %c0_9 = arith.constant 0 : index
    %c0_10 = arith.constant 0 : index
    %13 = vector.load %arg4[%c0_9, %c0_10] : memref<128x128xbf16, #tpu.memory_space<vmem>>, vector<128x128xbf16>
    %cst_11 = arith.constant dense<0.000000e+00> : vector<4x128xf32>
    %14 = tpu.matmul %12, %13, %cst_11 {dimension_numbers = #tpu.dot_dimension_numbers<[1], [0], [0], [1], [0, 0, 1, 1], [], []>} : vector<4x128xbf16>, vector<128x128xbf16>, vector<4x128xf32> -> vector<4x128xf32>
    %15 = vector.extract_strided_slice %14 {offsets = [0, 0], sizes = [4, 16], strides = [1, 1]} : vector<4x128xf32> to vector<4x16xf32>
    %16 = vector.extract_strided_slice %0 {offsets = [1, 0], sizes = [1, 16], strides = [1, 1]} : vector<8x128xf32> to vector<1x16xf32>
    %17 = vector.broadcast %16 : vector<1x16xf32> to vector<4x16xf32>
    %18 = arith.addf %15, %17 : vector<4x16xf32>
    %cst_12 = arith.constant 0.000000e+00 : f32
    %19 = vector.broadcast %cst_12 : f32 to vector<4x16xf32>
    %20 = arith.maximumf %18, %19 : vector<4x16xf32>
    %21 = vector.broadcast %cst_12 : f32 to vector<4x16xf32>
    %22 = arith.subf %18, %21 : vector<4x16xf32>
    %23 = arith.cmpf one, %22, %22 : vector<4x16xf32>
    %24 = vector.broadcast %cst_12 : f32 to vector<4x16xf32>
    %25 = arith.addf %18, %24 : vector<4x16xf32>
    %26 = math.absf %22 : vector<4x16xf32>
    %cst_13 = arith.constant 0.000000e+00 : f32
    %27 = vector.broadcast %cst_13 : f32 to vector<4x16xf32>
    %28 = arith.subf %27, %26 : vector<4x16xf32>
    %29 = math.exp %28 : vector<4x16xf32>
    %30 = math.log1p %29 : vector<4x16xf32>
    %31 = arith.addf %20, %30 : vector<4x16xf32>
    %32 = arith.select %23, %25, %31 : vector<4x16xi1>, vector<4x16xf32>
    %33 = vector.extract_strided_slice %14 {offsets = [0, 16], sizes = [4, 32], strides = [1, 1]} : vector<4x128xf32> to vector<4x32xf32>
    %c0_14 = arith.constant 0 : index
    %c0_15 = arith.constant 0 : index
    %c0_16 = arith.constant 0 : index
    %34 = vector.load %arg8[%c0_14, %c0_15, %c0_16] : memref<1x4x16xf32, #tpu.memory_space<vmem>>, vector<1x4x16xf32>
    %35 = vector.shape_cast %34 : vector<1x4x16xf32> to vector<4x16xf32>
    %36 = arith.mulf %32, %35 : vector<4x16xf32>
    %37 = arith.truncf %36 : vector<4x16xf32> to vector<4x16xbf16>
    %c0_17 = arith.constant 0 : index
    %c0_18 = arith.constant 0 : index
    %38 = vector.load %arg5[%c0_17, %c0_18] : memref<16x32xbf16, #tpu.memory_space<vmem>>, vector<16x32xbf16>
    %cst_19 = arith.constant dense<0.000000e+00> : vector<4x32xf32>
    %39 = tpu.matmul %37, %38, %cst_19 {dimension_numbers = #tpu.dot_dimension_numbers<[1], [0], [0], [1], [0, 0, 1, 1], [], []>} : vector<4x16xbf16>, vector<16x32xbf16>, vector<4x32xf32> -> vector<4x32xf32>
    %40 = arith.addf %33, %39 : vector<4x32xf32>
    %41 = vector.extract_strided_slice %0 {offsets = [2, 0], sizes = [1, 32], strides = [1, 1]} : vector<8x128xf32> to vector<1x32xf32>
    %42 = vector.broadcast %41 : vector<1x32xf32> to vector<4x32xf32>
    %43 = arith.addf %40, %42 : vector<4x32xf32>
    %cst_20 = arith.constant 0.000000e+00 : f32
    %44 = vector.broadcast %cst_20 : f32 to vector<4x32xf32>
    %45 = arith.maximumf %43, %44 : vector<4x32xf32>
    %46 = arith.truncf %45 : vector<4x32xf32> to vector<4x32xbf16>
    %c0_21 = arith.constant 0 : index
    %c0_22 = arith.constant 0 : index
    %47 = vector.load %arg6[%c0_21, %c0_22] : memref<32x128xbf16, #tpu.memory_space<vmem>>, vector<32x128xbf16>
    %cst_23 = arith.constant dense<0.000000e+00> : vector<4x128xf32>
    %48 = tpu.matmul %46, %47, %cst_23 {dimension_numbers = #tpu.dot_dimension_numbers<[1], [0], [0], [1], [0, 0, 1, 1], [], []>} : vector<4x32xbf16>, vector<32x128xbf16>, vector<4x128xf32> -> vector<4x128xf32>
    %49 = vector.extract_strided_slice %0 {offsets = [3, 0], sizes = [1, 128], strides = [1, 1]} : vector<8x128xf32> to vector<1x128xf32>
    %50 = vector.broadcast %49 : vector<1x128xf32> to vector<4x128xf32>
    %51 = arith.addf %48, %50 : vector<4x128xf32>
    %c0_24 = arith.constant 0 : index
    %c0_25 = arith.constant 0 : index
    %c0_26 = arith.constant 0 : index
    %52 = vector.load %arg9[%c0_24, %c0_25, %c0_26] : memref<1x4x128xf32, #tpu.memory_space<vmem>>, vector<1x4x128xf32>
    %53 = vector.shape_cast %52 : vector<1x4x128xf32> to vector<4x128xf32>
    %54 = vector.shape_cast %51 : vector<4x128xf32> to vector<1x4x128xf32>
    tpu.vector_store %arg9[%c0_24, %c0_25, %c0_26], %54 {strides = array<i32>} : memref<1x4x128xf32, #tpu.memory_space<vmem>>, vector<1x4x128xf32>,
    return
  }
  func.func @transform_0(%arg0: i32) -> (i32, i32) {
    %c0_i32 = arith.constant 0 : i32
    %c0_i32_0 = arith.constant 0 : i32
    return %arg0, %c0_i32 : i32, i32
  }
  func.func @transform_1(%arg0: i32) -> (i32, i32) {
    %c0_i32 = arith.constant 0 : i32
    %c0_i32_0 = arith.constant 0 : i32
    %c0_i32_1 = arith.constant 0 : i32
    return %c0_i32, %c0_i32_0 : i32, i32
  }
  func.func @transform_2(%arg0: i32) -> (i32, i32) {
    %c0_i32 = arith.constant 0 : i32
    %c0_i32_0 = arith.constant 0 : i32
    %c0_i32_1 = arith.constant 0 : i32
    return %c0_i32, %c0_i32_0 : i32, i32
  }
  func.func @transform_3(%arg0: i32) -> (i32, i32) {
    %c0_i32 = arith.constant 0 : i32
    %c0_i32_0 = arith.constant 0 : i32
    %c0_i32_1 = arith.constant 0 : i32
    return %c0_i32, %c0_i32_0 : i32, i32
  }
  func.func @transform_4(%arg0: i32) -> (i32, i32) {
    %c0_i32 = arith.constant 0 : i32
    %c0_i32_0 = arith.constant 0 : i32
    %c0_i32_1 = arith.constant 0 : i32
    return %c0_i32, %c0_i32_0 : i32, i32
  }
  func.func @transform_5(%arg0: i32) -> (i32, i32) {
    %c0_i32 = arith.constant 0 : i32
    %c0_i32_0 = arith.constant 0 : i32
    %c0_i32_1 = arith.constant 0 : i32
    return %c0_i32, %c0_i32_0 : i32, i32
  }
  func.func @transform_6(%arg0: i32) -> (i32, i32) {
    %c0_i32 = arith.constant 0 : i32
    %c0_i32_0 = arith.constant 0 : i32
    %c0_i32_1 = arith.constant 0 : i32
    return %c0_i32, %c0_i32_0 : i32, i32
  }
  func.func @transform_7(%arg0: i32) -> (i32, i32, i32) {
    %c0_i32 = arith.constant 0 : i32
    %c0_i32_0 = arith.constant 0 : i32
    %c0_i32_1 = arith.constant 0 : i32
    return %arg0, %c0_i32, %c0_i32_0 : i32, i32, i32
  }
  func.func @transform_8(%arg0: i32) -> (i32, i32, i32) {
    %c0_i32 = arith.constant 0 : i32
    %c0_i32_0 = arith.constant 0 : i32
    %c0_i32_1 = arith.constant 0 : i32
    return %arg0, %c0_i32, %c0_i32_0 : i32, i32, i32
  }
}

</mosaic_0001>

<bundles_post_ra>
// kernel: srnet_forward.1
= control target key start
LH: loop header
LB: loop body
LE: loop exit
PB: predicated region body
PF: predicated region fallthrough
CT: control target
= control target key end

     0   :  { %13 = vsyncpa [#allocation3], 0  ;;  %s1528_s0 = inlined_call_operand.vmem [shape: bf16[128,216], index: 0, kind: input, shape index: {}]   ;;  %s1529_s1 = inlined_call_operand.vmem [shape: bf16[216,128], index: 1, kind: input, shape index: {}]   ;;  %s1530_s2 = inlined_call_operand.vmem [shape: bf16[4,64], index: 2, kind: input, shape index: {}]   ;;  %s1531_s3 = inlined_call_operand.vmem [shape: bf16[128,128], index: 3, kind: input, shape index: {}]   ;;  %s1532_s4 = inlined_call_operand.vmem [shape: bf16[16,32], index: 4, kind: input, shape index: {}]   ;;  %s1533_s5 = inlined_call_operand.vmem [shape: bf16[32,128], index: 5, kind: input, shape index: {}]   ;;  %s1534_s6 = inlined_call_operand.vmem [shape: f32[8,128], index: 6, kind: input, shape index: {}]   ;;  %s1535_s7 = inlined_call_operand.vmem [shape: f32[2,4,16], index: 7, kind: input, shape index: {}]   ;;  %s1536_s8 = inlined_call_operand.hbm [shape: f32[2,4,128], index: 8, kind: output, shape index: {}]  }
   0x1   :  { %15 = vsyncpa [#allocation3 + $0x1], 0  ;;  %s1294_s27 = smov 0   ;;  %s1296_s28 = smov 0  }
   0x2   :  { %s1298_s29 = smov 0   ;;  %s1300_s30 = smov 0  }
   0x3 LB: > { %s1315_s9 = sadd.s32 4294967295, %s1241_s30   ;;  %s975_s10 = sadd.s32 4294967294, %s1241_s30   ;;  %s1241_s30 = sphi %s1300_s30, %s1542_s30   ;;  %s1237_s29 = sphi %s1298_s29, %s1541_s29   ;;  %s1233_s28 = sphi %s1296_s28, %s1540_s28   ;;  %s1229_s27 = sphi %s1294_s27, %s1539_s27  }
   0x4   : > { %s1319_s11 = sadd.s32 1, %s1241_s30   ;;  %s206_s12 = sadd.s32 1, %s1237_s29 }
   0x5   : > { %s203_s13 = ssub.s32 %s1241_s30, %s1319_s11  ;;  %p216_p0 = scmp.ne.s32.totalorder %s1237_s29, %s1233_s28 }
   0x6   : > { %p204_p1 = scmp.eq.s32.totalorder %s203_s13, 0  ;;  %p217_p2 = scmp.eq.s32.totalorder %s1315_s9, 1 }
   0x7   : > { %p222_p3 = scmp.ne.s32.totalorder %s1233_s28, %s1229_s27  ;;  %p223_p4 = scmp.eq.s32.totalorder %s975_s10, 1 }
   0x8   : > { %s1330_s14 = scalar_select %p204_p1, %s1237_s29, %s206_s12  }
   0x9   : > { %p1332_p5 = por %p217_p2, %p216_p0  ;;  %p1336_p6 = por %p223_p4, %p222_p3 }
   0xa   : > { %p978_p7 = scmp.ge.s32.totalorder %s1241_s30, 1  ;;  %p276_p8 = scmp.lt.s32.totalorder %s1241_s30, 3 }
   0xc   : > { %p277_p9 = pnand %p978_p7, %p276_p8 }
   0xd   : > { %v1138_v0 = vld [vmem:[%s1529_s1] sm:$0xff] (!%p277_p9)   ;;  %v1243_v1 = vmov (!%p277_p9), 0   ;;  %v1139_v2 = vld [vmem:[%s1529_s1 + $0x8] sm:$0xff] (!%p277_p9)   ;;  %s980_s21 = sshll.u32 (!%p277_p9), %s1315_s9, 3  ;;  %v1140_v3 = vld [vmem:[%s1529_s1 + $0x10] sm:$0xff] (!%p277_p9)   ;;  %vm484_vm0 = vcmask (!%p277_p9), 719872   ;;  %v363_v25 = vlaneseq (!%p277_p9) }
   0xe   : > { %280 = sbr.rel (%p277_p9) target bundleno = 1465 (0x5b9), region = 52  ;;  %501 = vmatprep.subr.bf16.mxu0 (!%p277_p9), %v1243_v1  ;;  %p316_p10 = scmp.lt.s32.totalorder (!%p277_p9), %s980_s21, 15  ;;  %v1141_v4 = vld [vmem:[%s1529_s1 + $0x18] sm:$0xff] (!%p277_p9)   ;;  %v1142_v5 = vld [vmem:[%s1529_s1 + $0x20] sm:$0xff] (!%p277_p9)   ;;  %v1143_v7 = vld [vmem:[%s1529_s1 + $0x28] sm:$0xff] (!%p277_p9)   ;;  %vm497_vm1 = vcmask (!%p277_p9), 1043456  }
   0xf   : > { %502 = vmatpush1.bf16.msra.mxu0 (!%p277_p9), %v1138_v0  ;;  %v1144_v8 = vld [vmem:[%s1529_s1 + $0x30] sm:$0xff] (!%p277_p9)   ;;  %v1145_v9 = vld [vmem:[%s1529_s1 + $0x38] sm:$0xff] (!%p277_p9)   ;;  %v1146_v10 = vld [vmem:[%s1529_s1 + $0x40] sm:$0xff] (!%p277_p9)   ;;  %v1244_v24 = vmov (!%p277_p9), 0.0   ;;  %vm1245_vm2 = vmmov (!%p277_p9), 0   ;;  %v1405_v26 = vshrl.u32 (!%p277_p9), %v363_v25, 7 }
  0x10   : > { %503 = vmatprep.subr.bf16.mxu0 (!%p277_p9), %v1243_v1  ;;  %v1147_v11 = vld [vmem:[%s1529_s1 + $0x48] sm:$0xff] (!%p277_p9)   ;;  %v1148_v12 = vld [vmem:[%s1529_s1 + $0x50] sm:$0xff] (!%p277_p9)   ;;  %v1149_v13 = vld [vmem:[%s1529_s1 + $0x58] sm:$0xff] (!%p277_p9)   ;;  %1048 = vmatprep.subr.bf16.mxu1 (!%p277_p9), %v1244_v24  ;;  %vm579_vm3 = vcmask (!%p277_p9), 523264   ;;  %p322_p11 = scmp.lt.s32.totalorder (!%p277_p9), %s1315_s9, 1  ;;  %vm762_vm6 = vcmask (!%p277_p9), 130048  }
  0x11   : > { %v1150_v14 = vld [vmem:[%s1529_s1 + $0x60] sm:$0xff] (!%p277_p9)   ;;  %v1151_v15 = vld [vmem:[%s1529_s1 + $0x68] ss:$0 sps:$4 sm:$0xff] (!%p277_p9)   ;;  %1056 = vmatprep.mubr.msk.bf16.mxu1 (!%p277_p9), %vm1245_vm2, %v1244_v24  ;;  %v365_v27 = vsub.s32 (!%p277_p9), 0, %v1405_v26  ;;  %s1246_s17 = smov (!%p277_p9), 16   ;;  %s1247_s18 = smov (!%p277_p9), 112  }
  0x12   : > { %v499_v16 = vsel (!%p277_p9), %vm497_vm1, %v1151_v15, 0  ;;  %v1411_v28 = vld [vmem:[%s1534_s6] sm:$0xff] (!%p277_p9)  ;;  %vm845_vm7 = vcmask (!%p277_p9), 261120   ;;  %s312_s19 = sand.u32 (!%p277_p9), 1, %s1233_s28   ;;  %s1248_s10 = smov (!%p277_p9), [#allocation2]  }
  0x13   : > { %504 = vmatpush1.bf16.msra.mxu0 (!%p277_p9), %v1139_v2  ;;  %v366_v29 = vrot.slane (!%p277_p9), %v1411_v28, %v365_v27  ;;  %v574_v2 = vld [vmem:[%s1530_s2] sm:$0x3] (!%p277_p9)  ;;  %s979_s20 = sshll.u32 (!%p277_p9), %s312_s19, 2  ;;  %s1183_s12 = sshll.u32 (!%p277_p9), %s1248_s10, 4  ;;  %s1184_s12 = int_to_ptr.vmem [resolvable:$false] %s1183_s12 }
  0x14   : > { %505 = vmatprep.subr.bf16.mxu0 (!%p277_p9), %v1243_v1 }
  0x15   : > { %s1544_s21 = smov (!%p316_p10, %s980_s21), 15 }
  0x16   : > { %s1028_s24 = sshll.u32 %s1544_s21, 3 }
  0x17   : > { %506 = vmatpush1.bf16.msra.mxu0 %v1140_v3  ;;  %s1358_s13 = scalar_lea.vmem %s1528_s0, %s1028_s24  ;;  %v1164_v3 = vld [vmem:[%s1531_s3] sm:$0xff]  }
  0x18   : > { %507 = vmatprep.subr.bf16.mxu0 %v1243_v1  ;;  %v1154_v6 = vld [vmem:[%s1358_s13 + $0x4] ss:$8 sps:$4 sm:$0xff]   ;;  %v1152_v17 = vld [vmem:[%s1358_s13] ss:$8 sps:$4 sm:$0xff]   ;;  %v1155_v18 = vld [vmem:[%s1358_s13 + $0x14] ss:$8 sps:$4 sm:$0xff]  }
  0x19   : > { %1006 = vmatprep.mubr.msk.bf16.mxu0 %vm484_vm0, %v1154_v6  ;;  %v1157_v19 = vld [vmem:[%s1358_s13 + $0x10] ss:$8 sps:$4 sm:$0xff]   ;;  %v1158_v20 = vld [vmem:[%s1358_s13 + $0x24] ss:$8 sps:$4 sm:$0xff]   ;;  %v1160_v21 = vld [vmem:[%s1358_s13 + $0x20] ss:$8 sps:$4 sm:$0xff]  }
  0x1a   : > { %v1161_v22 = vld [vmem:[%s1358_s13 + $0x34] ss:$8 sps:$4 sm:$0xff]   ;;  %v1163_v23 = vld [vmem:[%s1358_s13 + $0x30] ss:$8 sps:$4 sm:$0xff]   ;;  %s323_s21 = scalar_select %p322_p11, %s1315_s9, 1 }
  0x1b   : > { %508 = vmatpush1.bf16.msra.mxu0 %v1141_v4  ;;  %v1165_v4 = vld [vmem:[%s1531_s3 + $0x8] sm:$0xff]   ;;  %v1167_v6 = vld [vmem:[%s1531_s3 + $0x18] sm:$0xff]   ;;  %s891_s13 = scalar_lea.sflag [#allocation3], %s312_s19 }
  0x1c   : > { %509 = vmatprep.subr.bf16.mxu0 %v1243_v1  ;;  %s983_s22 = sshll.u32 %s323_s21, 2  ;;  %s1025_s21 = sshll.u32 %s1315_s9, 6 }
  0x1d   : > { %s325_s25 = scalar_lea.vmem %s1535_s7, %s983_s22  ;;  %s314_s22 = scalar_lea.vmem [#allocation2], %s979_s20 }
  0x1e   : > { %s904_s23 = sshll.u32 %s314_s22, 4  ;;  %s1486_s26 = scalar_lea.hbm %s1536_s8, %s1025_s21  ;;  %s1488_s23 = int_to_ptr.vmem [resolvable:$true] %s904_s23 }
  0x1f   : > { %510 = vmatpush1.bf16.msra.mxu0 %v1142_v5  ;;  %v1166_v5 = vld [vmem:[%s1531_s3 + $0x10] sm:$0xff]   ;;  %s1179_s9 = scalar_lea.vmem %s1488_s23, 64  ;;  %p1186_p1 = scmp.lt.s32.totalorder %s1488_s23, %s1184_s12 }
  0x20   : > { %511 = vmatprep.subr.bf16.mxu0 %v1243_v1  ;;  %p1180_p12 = scmp.ne.s32.totalorder %s1488_s23, %s1179_s9 }
  0x22   : > { %p1181_p13 = pnand %p1180_p12, %p1332_p5 }
  0x23   : > { %512 = vmatpush1.bf16.msra.mxu0 %v1143_v7  ;;  %v1168_v7 = vld [vmem:[%s1531_s3 + $0x20] sm:$0xff]  }
  0x24   : > { %513 = vmatprep.subr.bf16.mxu0 %v1243_v1  ;;  %p1182_p0 = pneg %p1181_p13 }
  0x27   : > { %514 = vmatpush1.bf16.msra.mxu0 %v1144_v8  ;;  %v1169_v8 = vld [vmem:[%s1531_s3 + $0x28] sm:$0xff]  }
  0x28   : > { %515 = vmatprep.subr.bf16.mxu0 %v1243_v1 }
  0x2b   : > { %516 = vmatpush1.bf16.msra.mxu0 %v1145_v9  ;;  %v1170_v9 = vld [vmem:[%s1531_s3 + $0x30] sm:$0xff]  }
  0x2c   : > { %517 = vmatprep.subr.bf16.mxu0 %v1243_v1 }
  0x2f   : > { %518 = vmatpush1.bf16.msra.mxu0 %v1146_v10  ;;  %v1171_v10 = vld [vmem:[%s1531_s3 + $0x38] sm:$0xff]  }
  0x30   : > { %519 = vmatprep.subr.bf16.mxu0 %v1243_v1 }
  0x33   : > { %520 = vmatpush1.bf16.msra.mxu0 %v1147_v11 }
  0x34   : > { %521 = vmatprep.subr.bf16.mxu0 %v1243_v1 }
  0x37   : > { %522 = vmatpush1.bf16.msra.mxu0 %v1148_v12 }
  0x38   : > { %523 = vmatprep.subr.bf16.mxu0 %v1243_v1 }
  0x3b   : > { %524 = vmatpush1.bf16.msra.mxu0 %v1149_v13 }
  0x3c   : > { %525 = vmatprep.subr.bf16.mxu0 %v1243_v1 }
  0x3f   : > { %526 = vmatpush1.bf16.msra.mxu0 %v1150_v14 }
  0x40   : > { %527 = vmatprep.subr.bf16.mxu0 %v1243_v1 }
  0x43   : > { %528 = vmatpush1.bf16.msra.mxu0 %v499_v16  ;;  %v1172_v16 = vld [vmem:[%s1532_s4] sm:$0xff]  }
  0x46   : > { %534 = vmatmul.mubr.bf16.vlgmr.msra.gmra.mrb[0].mxu0 %v1152_v17  ;;  %v730_v17 = vsub.s32 1, %v1405_v26 }
  0x47   : > { %1007 = vmatprep.mubr.msk.bf16.mxu0 %vm484_vm0, %v1155_v18 }
  0x48   : > { %v731_v18 = vrot.slane %v1411_v28, %v730_v17 }
  0x4e   : > { %542 = vmatmul.mubr.bf16.gmra.mrb[4].mxu0 %v1157_v19 }
  0x4f   : > { %1008 = vmatprep.mubr.msk.bf16.mxu0 %vm484_vm0, %v1158_v20 }
  0x56   : > { %550 = vmatmul.mubr.bf16.gmra.mrb[8].mxu0 %v1160_v21 }
  0x57   : > { %1009 = vmatprep.mubr.msk.bf16.mxu0 %vm484_vm0, %v1161_v22 }
  0x5e   : > { %558 = vmatmul.mubr.bf16.gmra.mrb[12].mxu0 %v1163_v23 }
 0x119   : > { %v535_v30 = vpop.f32.mrb[0].mxu0 }
 0x11a   : > { %v536_v31 = vadd.f32 %v535_v30, %v366_v29  ;;  %v537_v32 = vpop.f32.mrb[1].mxu0 }
 0x11b   : > { %v538_v33 = vpop.f32.mrb[2].mxu0 }
 0x11c   : > { %v539_v34 = vadd.f32 %v538_v33, %v366_v29  ;;  %v540_v35 = vpop.f32.mrb[3].mxu0  ;;  %v566_v36 = vmax.f32 %v536_v31, 0.0 }
 0x11e   : > { %v567_v37 = vmax.f32 %v539_v34, 0.0 }
 0x120   : > { %v575_v38 = vpack.c.bf16 %v567_v37, %v566_v36 }
 0x121   : > { %v543_v39 = vpop.f32.mrb[4].mxu0 }
 0x122   : > { %v544_v40 = vadd.f32 %v543_v39, %v366_v29  ;;  %v545_v41 = vpop.f32.mrb[5].mxu0  ;;  %1049 = vmatpush3.bf16.msra.mxu1 %v575_v38 }
 0x123   : > { %v546_v42 = vpop.f32.mrb[6].mxu0  ;;  %1050 = vmatprep.subr.bf16.mxu1 %v1244_v24  ;;  %v751_v41 = vld [vmem:[%s325_s25] sm:$0xf] }
 0x124   : > { %v547_v43 = vadd.f32 %v546_v42, %v366_v29  ;;  %v548_v44 = vpop.f32.mrb[7].mxu0  ;;  %v568_v45 = vmax.f32 %v544_v40, 0.0 }
 0x126   : > { %v569_v46 = vmax.f32 %v547_v43, 0.0 }
 0x128   : > { %v576_v47 = vpack.c.bf16 %v569_v46, %v568_v45  ;;  %v813_v45 = vsub.s32 2, %v1405_v26  ;;  %v1173_v46 = vld [vmem:[%s1533_s5] sm:$0xff]  }
 0x129   : > { %v551_v48 = vpop.f32.mrb[8].mxu0 }
 0x12a   : > { %v552_v49 = vadd.f32 %v551_v48, %v366_v29  ;;  %v553_v50 = vpop.f32.mrb[9].mxu0  ;;  %1051 = vmatpush3.bf16.msra.mxu1 %v576_v47  ;;  %v1174_v48 = vld [vmem:[%s1533_s5 + $0x8] sm:$0xff]  }
 0x12b   : > { %v554_v51 = vpop.f32.mrb[10].mxu0  ;;  %1052 = vmatprep.subr.bf16.mxu1 %v1244_v24  ;;  %v814_v50 = vrot.slane %v1411_v28, %v813_v45 }
 0x12c   : > { %v555_v52 = vadd.f32 %v554_v51, %v366_v29  ;;  %v556_v53 = vpop.f32.mrb[11].mxu0  ;;  %v570_v54 = vmax.f32 %v552_v49, 0.0 }
 0x12e   : > { %v571_v55 = vmax.f32 %v555_v52, 0.0 }
 0x130   : > { %v577_v56 = vpack.c.bf16 %v571_v55, %v570_v54 }
 0x131   : > { %v559_v57 = vpop.f32.mrb[12].mxu0 }
 0x132   : > { %v560_v58 = vadd.f32 %v559_v57, %v366_v29  ;;  %v561_v59 = vpop.f32.mrb[13].mxu0  ;;  %1053 = vmatpush3.bf16.msra.mxu1 %v577_v56 }
 0x133   : > { %v562_v60 = vpop.f32.mrb[14].mxu0  ;;  %1054 = vmatprep.subr.bf16.mxu1 %v1244_v24 }
 0x134   : > { %v563_v61 = vadd.f32 %v562_v60, %v366_v29  ;;  %v564_v62 = vpop.f32.mrb[15].mxu0  ;;  %v572_v63 = vmax.f32 %v560_v58, 0.0 }
 0x136   : > { %v573_v0 = vmax.f32 %v563_v61, 0.0 }
 0x138   : > { %v578_v1 = vpack.c.bf16 %v573_v0, %v572_v63 }
 0x13a   : > { %1055 = vmatpush3.bf16.msra.mxu1 %v578_v1 }
 0x13b   : > { %1060 = vmatprep.subr.bf16.mxu1 %v1244_v24 }
 0x13d   : > { %1057 = vmatmul.mubr.msk.bf16.vlgmr.msra.gmra.mrb[0].mxu1 %vm579_vm3, %v574_v2 }
 0x13e   : > { %1061 = vmatpush3.bf16.msra.mxu1 %v1164_v3  ;;  %1076 = vmatprep.mubr.msk.bf16.mxu1 %vm1245_vm2, %v1244_v24 }
 0x13f   : > { %1062 = vmatprep.subr.bf16.mxu1 %v1244_v24 }
 0x142   : > { %1063 = vmatpush3.bf16.msra.mxu1 %v1165_v4 }
 0x143   : > { %1064 = vmatprep.subr.bf16.mxu1 %v1244_v24 }
 0x146   : > { %1065 = vmatpush3.bf16.msra.mxu1 %v1166_v5 }
 0x147   : > { %1066 = vmatprep.subr.bf16.mxu1 %v1244_v24 }
 0x14a   : > { %1067 = vmatpush3.bf16.msra.mxu1 %v1167_v6 }
 0x14b   : > { %1068 = vmatprep.subr.bf16.mxu1 %v1244_v24 }
 0x14e   : > { %1069 = vmatpush3.bf16.msra.mxu1 %v1168_v7 }
 0x14f   : > { %1070 = vmatprep.subr.bf16.mxu1 %v1244_v24 }
 0x152   : > { %1071 = vmatpush3.bf16.msra.mxu1 %v1169_v8 }
 0x153   : > { %1072 = vmatprep.subr.bf16.mxu1 %v1244_v24 }
 0x156   : > { %1073 = vmatpush3.bf16.msra.mxu1 %v1170_v9 }
 0x157   : > { %1074 = vmatprep.subr.bf16.mxu1 %v1244_v24 }
 0x15a   : > { %1075 = vmatpush3.bf16.msra.mxu1 %v1171_v10 }
 0x15b   : > { %1080 = vmatprep.subr.bf16.mxu1 %v1244_v24 }
 0x210   : > { %v617_v11 = vpop.f32.mrb[0].mxu1 }
 0x211   : > { %v623_v12 = vpack.c.bf16 %v617_v11, %v617_v11  ;;  %v1058_v13 = vpop.f32.mrb[1].mxu1 }
 0x212   : > { %v620_v14 = vpop.f32.mrb[2].mxu1 }
 0x213   : > { %v1059_v15 = vpop.f32.mrb[3].mxu1  ;;  %1077 = vmatmul.mubr.bf16.vlgmr.msra.gmra.mrb[4].mxu1 %v623_v12 }
 0x214   : > { %1082 = vmatprep.mubr.msk.bf16.mxu1 %vm1245_vm2, %v1244_v24  ;;  %1081 = vmatpush3.bf16.msra.mxu1 %v1172_v16 }
 0x215   : > { %1086 = vmatprep.subr.bf16.mxu1 %v1244_v24 }
 0x2e6   : > { %v722_v19 = vpop.f32.mrb[4].mxu1 }
 0x2e7   : > { %v732_v20 = vadd.f32 %v731_v18, %v722_v19  ;;  %v1078_v21 = vpop.f32.mrb[5].mxu1 }
 0x2e8   : > { %v725_v22 = vpop.f32.mrb[6].mxu1 }
 0x2e9   : > { %v736_v23 = vand.u32 2147483647, %v732_v20  ;;  %v1079_v25 = vpop.f32.mrb[7].mxu1  ;;  %v733_v38 = vmax.f32 %v732_v20, 0.0  ;;  %vm734_vm5 = vcmp.ne.f32.partialorder %v732_v20, %v732_v20 }
 0x2eb   : > { %v737_v27 = vsub.f32 0.0, %v736_v23 }
 0x2ed   : > { %v738_v29 = vmul.f32 1.442695, %v737_v27 }
 0x2ef   : > { %1175 = vpow2.f32 %v738_v29 }
 0x2f9   : > { %v1176_v30 = vpop.eup %1175 }
 0x2fa   : > { %v740_v31 = vadd.f32 1.0, %v1176_v30  ;;  %v743_v32 = vmul.f32 -0.5, %v1176_v30  ;;  %v746_v34 = vand.u32 2147483647, %v1176_v30 }
 0x2fc   : > { %1177 = vlog2.f32 %v740_v31  ;;  %v744_v33 = vadd.f32 1.0, %v743_v32  ;;  %vm747_vm4 = vcmp.lt.f32.partialorder %v746_v34, 0.0004427343 }
 0x2fe   : > { %v745_v37 = vmul.f32 %v1176_v30, %v744_v33 }
 0x306   : > { %v1178_v35 = vpop.eup %1177 }
 0x307   : > { %v742_v36 = vmul.f32 0.6931472, %v1178_v35 }
 0x309   : > { %v748_v39 = vsel %vm747_vm4, %v745_v37, %v742_v36 }
 0x30a   : > { %v749_v40 = vadd.f32 %v748_v39, %v733_v38 }
 0x30c   : > { %v750_v42 = vsel %vm734_vm5, %v732_v20, %v749_v40 }
 0x30d   : > { %v752_v43 = vmul.f32 %v751_v41, %v750_v42 }
 0x30f   : > { %v753_v44 = vpack.c.bf16 %v752_v43, %v752_v43 }
 0x311   : > { %1083 = vmatmul.mubr.msk.bf16.vlgmr.msra.gmra.mrb[8].mxu1 %vm762_vm6, %v753_v44 }
 0x312   : > { %1090 = vmatprep.mubr.msk.bf16.mxu1 %vm1245_vm2, %v1244_v24  ;;  %1087 = vmatpush3.bf16.msra.mxu1 %v1173_v46 }
 0x313   : > { %1088 = vmatprep.subr.bf16.mxu1 %v1244_v24  ;;  %v828_v24 = vsub.s32 3, %v1405_v26 }
 0x315   : > { %v829_v60 = vrot.slane %v1411_v28, %v828_v24 }
 0x316   : > { %1089 = vmatpush3.bf16.msra.mxu1 %v1174_v48 }
 0x3e4   : > { %v800_v47 = vpop.f32.mrb[8].mxu1 }
 0x3e5   : > { %807 = vrot.lane.b32.xlu0 %v800_v47, %s1246_s17  ;;  %v1084_v49 = vpop.f32.mrb[9].mxu1 }
 0x3e6   : > { %v803_v51 = vpop.f32.mrb[10].mxu1 }
 0x3e7   : > { %v1085_v52 = vpop.f32.mrb[11].mxu1 }
 0x3e9   : > { %816 = vrot.lane.b32.xlu0 %v814_v50, %s1246_s17  ;;  %s1185_s17 = scalar_lea.vmem %s1184_s12, 128 }
 0x3ea   : > { %p1187_p2 = scmp.lt.s32.totalorder %s1185_s17, %s1179_s9 }
 0x3ec   : > { %p1188_p3 = por %p1187_p2, %p1186_p1 }
 0x3ee   : > { %p1189_p4 = pnand %p1188_p3, %p1182_p0 }
 0x457   : > { %v808_v53 = vpop.permute.xlu0 %807 }
 0x458   : > { %v810_v54 = vadd.f32 %v808_v53, %v722_v19 }
 0x45b   : > { %v817_v55 = vpop.permute.xlu0 %816 }
 0x45c   : > { %v819_v56 = vadd.f32 %v817_v55, %v810_v54 }
 0x45e   : > { %v820_v57 = vmax.f32 %v819_v56, 0.0 }
 0x460   : > { %v821_v58 = vpack.c.bf16 %v820_v57, %v820_v57 }
 0x462   : > { %831 = vrot.lane.b32.xlu1 %v821_v58, %s1247_s18 }
 0x4d4   : > { %v832_v59 = vpop.permute.xlu1 %831 }
 0x4d5   : > { %1091 = vmatmul.mubr.msk.bf16.vlgmr.msra.gmra.mrb[12].mxu1 %vm845_vm7, %v832_v59 }
 0x5a8   : > { %v883_v61 = vpop.f32.mrb[12].mxu1 }
 0x5a9   : > { %v884_v62 = vadd.f32 %v883_v61, %v829_v60  ;;  %v1092_v63 = vpop.f32.mrb[13].mxu1 }
 0x5aa   : > { %v886_v26 = vpop.f32.mrb[14].mxu1 }
 0x5ab   : > { %889 = vst [vmem:[%s314_s22] sm:$0xf] %v884_v62  ;;  %v1093_v0 = vpop.f32.mrb[15].mxu1 }
 0x5ac   : > { %1192 = shalt.err (!%p1189_p4)
}
 0x5ad   : > { %s1193_s18 = scalar_lea.hbm %s1486_s26, 64  ;;  %s1197_s21 = scalar_lea.hbm %s1536_s8, 128 }
 0x5ae   : > { %p1194_p7 = scmp.ne.s32.totalorder %s1486_s26, %s1193_s18  ;;  %p1198_p10 = scmp.lt.u32.totalorder %s1486_s26, %s1536_s8 }
 0x5af   : > { %p1199_p11 = scmp.lt.u32.totalorder %s1197_s21, %s1193_s18  ;;  %p1201_p13 = scmp.lt.u32.totalorder %s1193_s18, %s1486_s26 }
 0x5b0   : > { %p1195_p8 = pnand %p1194_p7, %p1332_p5 }
 0x5b1   : > { %p1200_p12 = por %p1199_p11, %p1198_p10 }
 0x5b2   : > { %p1196_p9 = pneg %p1195_p8 }
 0x5b3   : > { %p1202_p0 = por %p1201_p13, %p1200_p12 }
 0x5b5   : > { %p1203_p1 = pnand %p1202_p0, %p1196_p9 }
 0x5b7   : > { %1206 = shalt.err (!%p1203_p1)
}
 0x5b8   : > { %1094 = dma.vmem_to_hbm [thread:$0]  (%p1332_p5), %s1488_s23, 64, %s1486_s26, %s891_s13  }
 0x5b9 PF: > { %p1100_p2 = scmp.ge.s32.totalorder %s1241_s30, 2  ;;  %s916_s25 = sand.u32 1, %s1229_s27  }
 0x5ba   : > { %s917_s9 = scalar_lea.sflag [#allocation3], %s916_s25 }
 0x5bb   : > { %p1097_p3 = pnand %p1100_p2, %p1336_p6 }
 0x5bd   : > { %1224 = dma.done.wait (!%p1097_p3), %s917_s9, 64  }
 0x5be   : > { %1226 = vsyncadd (!%p1097_p3), %s917_s9, 4294967232  ;;  %p18_p4 = scmp.ge.s32.totalorder %s1319_s11, 4   ;;  %s1539_s27 = smov %s1233_s28 }
 0x5bf   : > { %s1540_s28 = smov %s1237_s29  ;;  %s1541_s29 = smov %s1330_s14 }
 0x5c0   : > { %s1542_s30 = smov %s1319_s11  ;;  %20 = sbr.rel (!%p18_p4) target bundleno = 3 (0x3), region = 90 }
 0x5c7   :  { %922 = vsyncpa [#allocation3], 1 }
 0x5c8   :  { %924 = vsyncpa [#allocation3 + $0x1], 1 }

</bundles_post_ra>
